<compile_context>
chip_gen: v5e
topology: v5e:2x2
jax: 0.10.0
libtpu: 0.0.40
codegen_flags: <defaults>
</compile_context>

<pallas_src>
import jax
import jax.numpy as jnp
from jax.experimental import pallas as pl
from jax.experimental.pallas import tpu as pltpu


def _bilinear_ranking_kernel(t1_ref, t2_ref, mcat_ref, bias_ref, lsm_ref):
    """One grid step over bt batch rows.

    t1_ref, t2_ref : (bt, emb)         raw input tiles (no HBM-side expansion)
    mcat_ref       : (emb, C*emb_pad)  class-stacked block-diagonal bilinear
                                       matrices; class c in cols [c*emb_pad, c*emb_pad+emb)
    bias_ref       : (1, C)
    lsm_ref        : (bt, C)           compact log_softmax output
    """
    n_classes = lsm_ref.shape[1]
    emb = t1_ref.shape[1]
    emb_pad = mcat_ref.shape[1] // n_classes

    t1 = t1_ref[...]
    t2 = t2_ref[...].astype(jnp.float32)

    # Single class-stacked MXU matmul:
    #   h_all[b, c*emb_pad + m] = (t1 @ M_c)[b, m]
    h_all = jnp.dot(t1, mcat_ref[...], preferred_element_type=jnp.float32)

    # logits[b, c] = sum_m t2[b, m] * h_all[b, c*emb_pad + m]
    # (per-class slice starts are 128-aligned because emb_pad is a multiple of 128)
    cols = []
    for c in range(n_classes):                      # static unroll; C is tiny
        h_c = h_all[:, c * emb_pad: c * emb_pad + emb]
        cols.append(jnp.sum(t2 * h_c, axis=-1, keepdims=True))
    logits = jnp.concatenate(cols, axis=-1) + bias_ref[...].astype(jnp.float32)

    # Exact, numerically stable log_softmax (no approx reciprocal, no divide).
    m = jnp.max(logits, axis=-1, keepdims=True)
    z = logits - m
    s = jnp.sum(jnp.exp(z), axis=-1, keepdims=True)
    lsm_ref[...] = (z - jnp.log(s)).astype(lsm_ref.dtype)


def _pick_batch_tile(batch, per_row_bytes, fixed_bytes, budget_bytes,
                     min_steps=2, max_tile=4096):
    """Largest multiple-of-8 divisor of `batch` that fits the VMEM budget and
    keeps at least `min_steps` grid steps (pipelining + v7x's 2 TensorCores).
    Falls back to fewer steps / the full batch when the shape forces it."""
    cands = [t for t in range(8, min(batch, max_tile) + 1, 8) if batch % t == 0]
    if not cands:
        return batch                       # tiny / odd batch: one full-batch step
    fits = [t for t in cands if fixed_bytes + t * per_row_bytes <= budget_bytes]
    if not fits:
        fits = [min(cands)]
    multi = [t for t in fits if batch // t >= min_steps]
    return max(multi) if multi else max(fits)


def bilinear_ranking(text1, text2, weight_fc, bias, *, emb_size, block_size,
                     n_classes, batch_tile=None):
    """text1, text2: (B, emb_size).
       weight_fc: (n_classes, emb_size*block_size) — PyTorch nn.Linear layout.
       bias: (n_classes,).  Returns (softmax, log_softmax), both (B, n_classes) f32."""
    assert emb_size % block_size == 0
    B = text1.shape[0]
    nb = emb_size // block_size
    in_dtype = text1.dtype
    # Per-class column stride, rounded to 128 lanes so in-kernel slices start aligned.
    emb_pad = ((emb_size + 127) // 128) * 128
    n_cat = n_classes * emb_pad

    # ---- one-time parameter densification (wrapper side, pure layout) ----
    # M_c[k*bs+i, l*bs+j] = delta_{kl} * W[c, k*bs*bs + i*bs + j]  (block-diagonal)
    w4 = weight_fc.reshape(n_classes, nb, block_size, block_size).astype(jnp.float32)
    eye_k = jnp.eye(nb, dtype=jnp.float32)
    m_c = jnp.einsum('ckij,kl->ckilj', w4, eye_k).reshape(n_classes, emb_size, emb_size)
    m_cat = jnp.zeros((n_classes, emb_size, emb_pad), jnp.float32)
    m_cat = m_cat.at[:, :, :emb_size].set(m_c)
    m_cat = jnp.transpose(m_cat, (1, 0, 2)).reshape(emb_size, n_cat).astype(in_dtype)
    bias_2d = bias.reshape(1, n_classes).astype(jnp.float32)

    # ---- batch tile: as large as the VMEM budget allows, >= 2 grid steps ----
    itemsize = text1.dtype.itemsize
    per_row_bytes = (2 * 2 * emb_size * itemsize      # t1, t2 (double-buffered)
                     + 3 * n_cat * 4                  # h_all + epilogue temps (f32)
                     + 2 * 2 * n_classes * 4)         # lsm output (double-buffered)
    fixed_bytes = 2 * emb_size * n_cat * m_cat.dtype.itemsize + 2 * 128 * 4
    budget_bytes = 20 * 1024 * 1024                   # safe on v5e/v6e/v7x
    bt = _pick_batch_tile(B, per_row_bytes, fixed_bytes, budget_bytes) \
        if batch_tile is None else batch_tile
    assert B % bt == 0, "batch_tile must divide the batch"
    grid = (B // bt,)

    lsm = pl.pallas_call(
        _bilinear_ranking_kernel,
        out_shape=jax.ShapeDtypeStruct((B, n_classes), jnp.float32),
        grid_spec=pltpu.PrefetchScalarGridSpec(
            num_scalar_prefetch=0,
            grid=grid,
            in_specs=[
                pl.BlockSpec((bt, emb_size), lambda i: (i, 0)),
                pl.BlockSpec((bt, emb_size), lambda i: (i, 0)),
                pl.BlockSpec((emb_size, n_cat), lambda i: (0, 0)),   # constant weight
                pl.BlockSpec((1, n_classes), lambda i: (0, 0)),      # constant bias
            ],
            out_specs=pl.BlockSpec((bt, n_classes), lambda i: (i, 0)),
        ),
        compiler_params=pltpu.CompilerParams(
            dimension_semantics=("parallel",),
            vmem_limit_bytes=32 * 1024 * 1024),
    )(text1, text2, m_cat, bias_2d)

    # softmax = exp(log_softmax): exact, and halves kernel writeback vs. a 2nd output.
    sm = jnp.exp(lsm)
    return sm, lsm


def _reference(text1, text2, weight_fc, bias, *, emb_size, block_size):
    """Pure-JAX reference matching the PyTorch forward exactly."""
    B = text1.shape[0]
    nb = emb_size // block_size
    b1 = text1.reshape(B, nb, block_size)
    b2 = text2.reshape(B, nb, block_size)
    bl = (b1[:, :, :, None] * b2[:, :, None, :]).reshape(B, emb_size * block_size)
    logits = jnp.dot(bl, weight_fc.T, precision=jax.lax.Precision.HIGHEST) + bias[None, :]
    return jax.nn.softmax(logits, axis=1), jax.nn.log_softmax(logits, axis=-1)


if __name__ == "__main__":
    # Small shapes consistent with the module: emb_size=32, block_size=8,
    # n_classes=2; batch=128 -> tile 64 and a 2-step "parallel" grid.
    B, EMB, BS, C = 128, 32, 8, 2
    F = EMB * BS

    key = jax.random.PRNGKey(0)
    k1, k2, kw, kb = jax.random.split(key, 4)
    text1 = jax.random.normal(k1, (B, EMB), dtype=jnp.float32)
    text2 = jax.random.normal(k2, (B, EMB), dtype=jnp.float32)
    # Deterministic synthetic nn.Linear(emb*block -> n_classes) parameters (out, in).
    weight_fc = jax.random.normal(kw, (C, F), dtype=jnp.float32) * (1.0 / jnp.sqrt(F))
    bias = jax.random.normal(kb, (C,), dtype=jnp.float32) * 0.01

    sm, lsm = bilinear_ranking(text1, text2, weight_fc, bias,
                               emb_size=EMB, block_size=BS, n_classes=C)
    jax.block_until_ready((sm, lsm))

    sm_ref, lsm_ref = _reference(text1, text2, weight_fc, bias,
                                 emb_size=EMB, block_size=BS)
    assert sm.shape == (B, C) and lsm.shape == (B, C)
    assert jnp.allclose(lsm, lsm_ref, atol=5e-4, rtol=5e-4), "log_softmax mismatch"
    assert jnp.allclose(sm, sm_ref, atol=5e-4, rtol=5e-4), "softmax mismatch"

    print("KERNEL_OK")
</pallas_src>

<mosaic_0001>
module attributes {stable_mosaic.version = 11 : i64} {
  func.func @_bilinear_ranking_kernel(%arg0: i32, %arg1: memref<64x32xf32, #tpu.memory_space<vmem>>, %arg2: memref<64x32xf32, #tpu.memory_space<vmem>>, %arg3: memref<32x256xf32, #tpu.memory_space<vmem>>, %arg4: memref<1x2xf32, #tpu.memory_space<vmem>>, %arg5: memref<64x2xf32, #tpu.memory_space<vmem>>) attributes {dimension_semantics = [#tpu.dimension_semantics<parallel>], iteration_bounds = array<i64: 2>, scalar_prefetch = 0 : i64, scratch_operands = 0 : i64, tpu.core_type = #tpu.core_type<tc>, window_params = [{transform_indices = @transform_0, window_bounds = array<i64: 64, 32>}, {transform_indices = @transform_1, window_bounds = array<i64: 64, 32>}, {pipeline_mode = #tpu.pipeline_mode<synchronous>, transform_indices = @transform_2, window_bounds = array<i64: 32, 256>}, {pipeline_mode = #tpu.pipeline_mode<synchronous>, transform_indices = @transform_3, window_bounds = array<i64: 1, 2>}, {transform_indices = @transform_4, window_bounds = array<i64: 64, 2>}]} {
    %c0 = arith.constant 0 : index
    %c0_0 = arith.constant 0 : index
    %0 = vector.load %arg1[%c0, %c0_0] : memref<64x32xf32, #tpu.memory_space<vmem>>, vector<64x32xf32>
    %c0_1 = arith.constant 0 : index
    %c0_2 = arith.constant 0 : index
    %1 = vector.load %arg2[%c0_1, %c0_2] : memref<64x32xf32, #tpu.memory_space<vmem>>, vector<64x32xf32>
    %c0_3 = arith.constant 0 : index
    %c0_4 = arith.constant 0 : index
    %2 = vector.load %arg3[%c0_3, %c0_4] : memref<32x256xf32, #tpu.memory_space<vmem>>, vector<32x256xf32>
    %cst = arith.constant dense<0.000000e+00> : vector<64x256xf32>
    %3 = tpu.matmul %0, %2, %cst {dimension_numbers = #tpu.dot_dimension_numbers<[1], [0], [0], [1], [0, 0, 1, 1], [], []>} : vector<64x32xf32>, vector<32x256xf32>, vector<64x256xf32> -> vector<64x256xf32>
    %4 = vector.extract_strided_slice %3 {offsets = [0, 0], sizes = [64, 32], strides = [1, 1]} : vector<64x256xf32> to vector<64x32xf32>
    %5 = arith.mulf %1, %4 : vector<64x32xf32>
    %cst_5 = arith.constant dense<0.000000e+00> : vector<64xf32>
    %6 = vector.multi_reduction <add>, %5, %cst_5 [1] : vector<64x32xf32> to vector<64xf32>
    %7 = vector.shape_cast %6 : vector<64xf32> to vector<64x1xf32>
    %8 = vector.extract_strided_slice %3 {offsets = [0, 128], sizes = [64, 32], strides = [1, 1]} : vector<64x256xf32> to vector<64x32xf32>
    %9 = arith.mulf %1, %8 : vector<64x32xf32>
    %cst_6 = arith.constant dense<0.000000e+00> : vector<64xf32>
    %10 = vector.multi_reduction <add>, %9, %cst_6 [1] : vector<64x32xf32> to vector<64xf32>
    %11 = vector.shape_cast %10 : vector<64xf32> to vector<64x1xf32>
    %12 = tpu.concatenate %7, %11 in 1 : vector<64x1xf32>, vector<64x1xf32> -> vector<64x2xf32>
    %c0_7 = arith.constant 0 : index
    %c0_8 = arith.constant 0 : index
    %13 = vector.load %arg4[%c0_7, %c0_8] : memref<1x2xf32, #tpu.memory_space<vmem>>, vector<1x2xf32>
    %14 = vector.broadcast %13 : vector<1x2xf32> to vector<64x2xf32>
    %15 = arith.addf %12, %14 : vector<64x2xf32>
    %cst_9 = arith.constant dense<0xFF800000> : vector<64xf32>
    %16 = vector.multi_reduction <maximumf>, %15, %cst_9 [1] : vector<64x2xf32> to vector<64xf32>
    %17 = vector.shape_cast %16 : vector<64xf32> to vector<64x1xf32>
    %18 = vector.broadcast %17 : vector<64x1xf32> to vector<64x2xf32>
    %19 = arith.subf %15, %18 : vector<64x2xf32>
    %20 = math.exp %19 : vector<64x2xf32>
    %cst_10 = arith.constant dense<0.000000e+00> : vector<64xf32>
    %21 = vector.multi_reduction <add>, %20, %cst_10 [1] : vector<64x2xf32> to vector<64xf32>
    %22 = vector.shape_cast %21 : vector<64xf32> to vector<64x1xf32>
    %23 = math.log %22 : vector<64x1xf32>
    %24 = vector.broadcast %23 : vector<64x1xf32> to vector<64x2xf32>
    %25 = arith.subf %19, %24 : vector<64x2xf32>
    %c0_11 = arith.constant 0 : index
    %c0_12 = arith.constant 0 : index
    %26 = vector.load %arg5[%c0_11, %c0_12] : memref<64x2xf32, #tpu.memory_space<vmem>>, vector<64x2xf32>
    tpu.vector_store %arg5[%c0_11, %c0_12], %25 {strides = array<i32>} : memref<64x2xf32, #tpu.memory_space<vmem>>, vector<64x2xf32>,
    return
  }
  func.func @transform_0(%arg0: i32) -> (i32, i32) {
    %c0_i32 = arith.constant 0 : i32
    %c0_i32_0 = arith.constant 0 : i32
    return %arg0, %c0_i32 : i32, i32
  }
  func.func @transform_1(%arg0: i32) -> (i32, i32) {
    %c0_i32 = arith.constant 0 : i32
    %c0_i32_0 = arith.constant 0 : i32
    return %arg0, %c0_i32 : i32, i32
  }
  func.func @transform_2(%arg0: i32) -> (i32, i32) {
    %c0_i32 = arith.constant 0 : i32
    %c0_i32_0 = arith.constant 0 : i32
    %c0_i32_1 = arith.constant 0 : i32
    return %c0_i32, %c0_i32_0 : i32, i32
  }
  func.func @transform_3(%arg0: i32) -> (i32, i32) {
    %c0_i32 = arith.constant 0 : i32
    %c0_i32_0 = arith.constant 0 : i32
    %c0_i32_1 = arith.constant 0 : i32
    return %c0_i32, %c0_i32_0 : i32, i32
  }
  func.func @transform_4(%arg0: i32) -> (i32, i32) {
    %c0_i32 = arith.constant 0 : i32
    %c0_i32_0 = arith.constant 0 : i32
    return %arg0, %c0_i32 : i32, i32
  }
}

</mosaic_0001>

<bundles_post_ra>
// kernel: tpu_custom_call.1
= control target key start
LH: loop header
LB: loop body
LE: loop exit
PB: predicated region body
PF: predicated region fallthrough
CT: control target
= control target key end

     0   :  { %s723_s15 = smov 0   ;;  %s887_s0 = inlined_call_operand.vmem [shape: f32[128,32], index: 0, kind: input, shape index: {}]   ;;  %s888_s1 = inlined_call_operand.vmem [shape: f32[128,32], index: 1, kind: input, shape index: {}]   ;;  %s889_s2 = inlined_call_operand.vmem [shape: f32[32,256], index: 2, kind: input, shape index: {}]   ;;  %s890_s3 = inlined_call_operand.vmem [shape: f32[1,2], index: 3, kind: input, shape index: {}]   ;;  %s891_s4 = inlined_call_operand.vmem [shape: f32[128,2], index: 4, kind: output, shape index: {}]  }
   0x1 LB: > { %s612_s16 = sadd.s32 4294967295, %s696_s15   ;;  %p616_p0 = scmp.ge.s32.totalorder %s696_s15, 1  ;;  %s696_s15 = sphi %s723_s15, %s14_s15  }
   0x2   : > { %p174_p1 = scmp.lt.s32.totalorder %s696_s15, 3 }
   0x4   : > { %p175_p2 = pnand %p616_p0, %p174_p1 }
   0x5   : > { %s617_s23 = sshll.u32 (!%p175_p2), %s612_s16, 3 }
   0x6   : > { %178 = sbr.rel (%p175_p2) target bundleno = 572 (0x23c), region = 36  ;;  %p206_p3 = scmp.lt.s32.totalorder (!%p175_p2), %s617_s23, 15 }
   0xb   : > { %v245_v0 = vld [vmem:[%s889_s2 + $0x30] sm:$0xff]  ;;  %v246_v1 = vld [vmem:[%s889_s2 + $0x38] sm:$0xff]  ;;  %v243_v2 = vld [vmem:[%s889_s2 + $0x20] sm:$0xff]  ;;  %s893_s23 = smov (!%p206_p3, %s617_s23), 15  ;;  %vm247_vm0 = vcmask 261120   ;;  %vm418_vm1 = vcmask 7168  }
   0xc   : > { %284 = vmatpush.msra.mxu0 %v245_v0  ;;  %325 = vmatpush.msra.mxu1 %v246_v1  ;;  %v244_v3 = vld [vmem:[%s889_s2 + $0x28] sm:$0xff]  ;;  %v241_v4 = vld [vmem:[%s889_s2 + $0x10] sm:$0xff]  ;;  %v242_v5 = vld [vmem:[%s889_s2 + $0x18] sm:$0xff]  ;;  %s755_s8 = sshll.u32 %s893_s23, 3  ;;  %vm439_vm2 = vcmask 15360  }
   0xd   : > { %641 = vmatpush.msra.mxu2 %v245_v0  ;;  %645 = vmatpush.msra.mxu3 %v246_v1  ;;  %v239_v6 = vld [vmem:[%s889_s2] sm:$0xff]  ;;  %v240_v7 = vld [vmem:[%s889_s2 + $0x8] sm:$0xff]  ;;  %s209_s11 = scalar_lea.vmem %s887_s0, %s755_s8  ;;  %s781_s14 = scalar_lea.vmem %s888_s1, %s755_s8 }
   0xe   : > { %285 = vmatpush.msra.mxu0 %v243_v2  ;;  %326 = vmatpush.msra.mxu1 %v244_v3  ;;  %v223_v8 = vld [vmem:[%s209_s11] sm:$0xff]  ;;  %v224_v10 = vld [vmem:[%s209_s11 + $0x8] sm:$0xff]  ;;  %v225_v12 = vld [vmem:[%s209_s11 + $0x10] sm:$0xff]  ;;  %s859_s20 = scalar_lea.vmem %s891_s4, %s755_s8 }
   0xf   : > { %642 = vmatpush.msra.mxu2 %v243_v2  ;;  %646 = vmatpush.msra.mxu3 %v244_v3  ;;  %v227_v9 = vld [vmem:[%s209_s11 + $0x20] sm:$0xff]  ;;  %v228_v11 = vld [vmem:[%s209_s11 + $0x28] sm:$0xff]  ;;  %v229_v13 = vld [vmem:[%s209_s11 + $0x30] sm:$0xff] }
  0x10   : > { %286 = vmatpush.msra.mxu0 %v241_v4  ;;  %327 = vmatpush.msra.mxu1 %v242_v5  ;;  %v226_v14 = vld [vmem:[%s209_s11 + $0x18] sm:$0xff]  ;;  %v231_v16 = vld [vmem:[%s781_s14] sm:$0xff]  ;;  %v232_v32 = vld [vmem:[%s781_s14 + $0x8] sm:$0xff] }
  0x11   : > { %643 = vmatpush.msra.mxu2 %v241_v4  ;;  %647 = vmatpush.msra.mxu3 %v242_v5  ;;  %v230_v15 = vld [vmem:[%s209_s11 + $0x38] sm:$0xff]  ;;  %v235_v23 = vld [vmem:[%s781_s14 + $0x20] sm:$0xff]  ;;  %v233_v33 = vld [vmem:[%s781_s14 + $0x10] sm:$0xff] }
  0x12   : > { %287 = vmatpush.msra.mxu0 %v239_v6  ;;  %328 = vmatpush.msra.mxu1 %v240_v7  ;;  %v236_v34 = vld [vmem:[%s781_s14 + $0x28] sm:$0xff]  ;;  %v234_v46 = vld [vmem:[%s781_s14 + $0x18] sm:$0xff]  ;;  %v237_v54 = vld [vmem:[%s781_s14 + $0x30] sm:$0xff] }
  0x13   : > { %623 = vmatmul.msk.f32.vlgmr.msra.gmra.mxu0 %vm247_vm0, %v223_v8  ;;  %631 = vmatmul.msk.f32.vlgmr.msra.gmra.mxu1 %vm247_vm0, %v223_v8  ;;  %v238_v63 = vld [vmem:[%s781_s14 + $0x38] sm:$0xff]  ;;  %v657_v8 = vld [vmem:[%s890_s3] ss:$0 sm:$0xff] }
  0x14   : > { %644 = vmatpush.msra.mxu2 %v239_v6  ;;  %648 = vmatpush.msra.mxu3 %v240_v7 }
  0x15   : > { %627 = vmatmul.msk.f32.vlgmr.msra.gmra.mxu2 %vm247_vm0, %v227_v9  ;;  %635 = vmatmul.msk.f32.vlgmr.msra.gmra.mxu3 %vm247_vm0, %v227_v9 }
  0x1b   : > { %624 = vmatmul.msk.f32.gmra.mxu0 %vm247_vm0, %v224_v10  ;;  %632 = vmatmul.msk.f32.gmra.mxu1 %vm247_vm0, %v224_v10 }
  0x1d   : > { %628 = vmatmul.msk.f32.gmra.mxu2 %vm247_vm0, %v228_v11  ;;  %636 = vmatmul.msk.f32.gmra.mxu3 %vm247_vm0, %v228_v11 }
  0x23   : > { %625 = vmatmul.msk.f32.gmra.mxu0 %vm247_vm0, %v225_v12  ;;  %633 = vmatmul.msk.f32.gmra.mxu1 %vm247_vm0, %v225_v12 }
  0x25   : > { %629 = vmatmul.msk.f32.gmra.mxu2 %vm247_vm0, %v229_v13  ;;  %637 = vmatmul.msk.f32.gmra.mxu3 %vm247_vm0, %v229_v13 }
  0x2b   : > { %634 = vmatmul.msk.f32.gmra.mxu1 %vm247_vm0, %v226_v14  ;;  %626 = vmatmul.msk.f32.gmra.mxu0 %vm247_vm0, %v226_v14 }
  0x2d   : > { %630 = vmatmul.msk.f32.gmra.mxu2 %vm247_vm0, %v230_v15  ;;  %638 = vmatmul.msk.f32.gmra.mxu3 %vm247_vm0, %v230_v15 }
  0x90   : > { %v289_v17 = vpop.f32.mrf.mxu0  ;;  %v330_v18 = vpop.f32.mrf.mxu1 }
  0x91   : > { %v354_v19 = vmul.f32 %v289_v17, %v231_v16  ;;  %v386_v20 = vmul.f32 %v330_v18, %v231_v16 }
  0x93   : > { %v394_v21 = vsel %vm247_vm0, %v386_v20, 0.0  ;;  %v362_v22 = vsel %vm247_vm0, %v354_v19, 0.0 }
  0x94   : > { %395 = vadd.xlane.f32.xlu2 %v394_v21  ;;  %363 = vadd.xlane.f32.xlu0 %v362_v22 }
  0x98   : > { %v292_v24 = vpop.f32.mrf.mxu0  ;;  %v301_v25 = vpop.f32.mrf.mxu2 }
  0x99   : > { %v358_v26 = vmul.f32 %v301_v25, %v235_v23  ;;  %v333_v27 = vpop.f32.mrf.mxu1  ;;  %v342_v28 = vpop.f32.mrf.mxu3  ;;  %v355_v35 = vmul.f32 %v292_v24, %v232_v32 }
  0x9a   : > { %v390_v29 = vmul.f32 %v342_v28, %v235_v23  ;;  %v387_v47 = vmul.f32 %v333_v27, %v232_v32 }
  0x9b   : > { %v374_v30 = vsel %vm247_vm0, %v358_v26, 0.0  ;;  %v365_v44 = vsel %vm247_vm0, %v355_v35, 0.0 }
  0x9c   : > { %375 = vadd.xlane.f32.xlu2 %v374_v30  ;;  %v406_v31 = vsel %vm247_vm0, %v390_v29, 0.0  ;;  %v397_v56 = vsel %vm247_vm0, %v387_v47, 0.0 }
  0x9d   : > { %407 = vadd.xlane.f32.xlu0 %v406_v31 }
  0xa0   : > { %v295_v36 = vpop.f32.mrf.mxu0  ;;  %v304_v37 = vpop.f32.mrf.mxu2 }
  0xa1   : > { %v356_v38 = vmul.f32 %v295_v36, %v233_v33  ;;  %v359_v39 = vmul.f32 %v304_v37, %v236_v34  ;;  %v336_v40 = vpop.f32.mrf.mxu1  ;;  %v345_v41 = vpop.f32.mrf.mxu3 }
  0xa2   : > { %v388_v45 = vmul.f32 %v336_v40, %v233_v33  ;;  %v391_v6 = vmul.f32 %v345_v41, %v236_v34 }
  0xa3   : > { %v377_v42 = vsel %vm247_vm0, %v359_v39, 0.0  ;;  %v368_v43 = vsel %vm247_vm0, %v356_v38, 0.0 }
  0xa4   : > { %378 = vadd.xlane.f32.xlu2 %v377_v42  ;;  %369 = vadd.xlane.f32.xlu1 %v368_v43  ;;  %v400_v50 = vsel %vm247_vm0, %v388_v45, 0.0  ;;  %v409_v7 = vsel %vm247_vm0, %v391_v6, 0.0 }
  0xa5   : > { %366 = vadd.xlane.f32.xlu0 %v365_v44 }
  0xa8   : > { %v307_v48 = vpop.f32.mrf.mxu2  ;;  %v298_v53 = vpop.f32.mrf.mxu0 }
  0xa9   : > { %v339_v49 = vpop.f32.mrf.mxu1  ;;  %v348_v51 = vpop.f32.mrf.mxu3  ;;  %v357_v57 = vmul.f32 %v298_v53, %v234_v46  ;;  %v360_v58 = vmul.f32 %v307_v48, %v237_v54 }
  0xaa   : > { %v389_v52 = vmul.f32 %v339_v49, %v234_v46  ;;  %v392_v59 = vmul.f32 %v348_v51, %v237_v54 }
  0xab   : > { %v371_v60 = vsel %vm247_vm0, %v357_v57, 0.0  ;;  %v380_v62 = vsel %vm247_vm0, %v360_v58, 0.0 }
  0xac   : > { %v403_v55 = vsel %vm247_vm0, %v389_v52, 0.0  ;;  %401 = vadd.xlane.f32.xlu1 %v400_v50  ;;  %v412_v61 = vsel %vm247_vm0, %v392_v59, 0.0 }
  0xad   : > { %404 = vadd.xlane.f32.xlu2 %v403_v55  ;;  %398 = vadd.xlane.f32.xlu0 %v397_v56 }
  0xb0   : > { %v310_v0 = vpop.f32.mrf.mxu2 }
  0xb1   : > { %v351_v1 = vpop.f32.mrf.mxu3  ;;  %v361_v2 = vmul.f32 %v310_v0, %v238_v63 }
  0xb2   : > { %v393_v3 = vmul.f32 %v351_v1, %v238_v63 }
  0xb3   : > { %v383_v4 = vsel %vm247_vm0, %v361_v2, 0.0 }
  0xb4   : > { %372 = vadd.xlane.f32.xlu1 %v371_v60  ;;  %v415_v5 = vsel %vm247_vm0, %v393_v3, 0.0 }
  0xb5   : > { %413 = vadd.xlane.f32.xlu2 %v412_v61  ;;  %381 = vadd.xlane.f32.xlu0 %v380_v62 }
  0xbc   : > { %384 = vadd.xlane.f32.xlu1 %v383_v4 }
  0xbd   : > { %416 = vadd.xlane.f32.xlu0 %v415_v5 }
  0xc4   : > { %410 = vadd.xlane.f32.xlu1 %v409_v7 }
 0x107   : > { %v396_v9 = vpop.xlane.xlu2 %395  ;;  %v364_v10 = vpop.xlane.xlu0 %363 }
 0x108   : > { %v419_v11 = vsel %vm418_vm1, %v364_v10, %v396_v9 }
 0x109   : > { %v431_v12 = vadd.f32 %v657_v8, %v419_v11 }
 0x10b   : > { %v440_v13 = vsel %vm439_vm2, %v431_v12, -inf }
 0x10c   : > { %441 = vmax.xlane.f32.xlu1 %v440_v13 }
 0x10f   : > { %v376_v14 = vpop.xlane.xlu2 %375 }
 0x110   : > { %v408_v15 = vpop.xlane.xlu0 %407 }
 0x111   : > { %v423_v16 = vsel %vm418_vm1, %v376_v14, %v408_v15 }
 0x112   : > { %v435_v17 = vadd.f32 %v657_v8, %v423_v16 }
 0x114   : > { %v452_v18 = vsel %vm439_vm2, %v435_v17, -inf }
 0x115   : > { %453 = vmax.xlane.f32.xlu2 %v452_v18 }
 0x117   : > { %v379_v19 = vpop.xlane.xlu2 %378  ;;  %v370_v20 = vpop.xlane.xlu1 %369 }
 0x118   : > { %v367_v21 = vpop.xlane.xlu0 %366 }
 0x11f   : > { %v402_v22 = vpop.xlane.xlu1 %401 }
 0x120   : > { %v405_v23 = vpop.xlane.xlu2 %404  ;;  %v399_v24 = vpop.xlane.xlu0 %398  ;;  %v421_v25 = vsel %vm418_vm1, %v370_v20, %v402_v22 }
 0x121   : > { %v420_v26 = vsel %vm418_vm1, %v367_v21, %v399_v24  ;;  %v433_v27 = vadd.f32 %v657_v8, %v421_v25 }
 0x122   : > { %v432_v28 = vadd.f32 %v657_v8, %v420_v26 }
 0x123   : > { %v446_v29 = vsel %vm439_vm2, %v433_v27, -inf }
 0x124   : > { %v443_v30 = vsel %vm439_vm2, %v432_v28, -inf  ;;  %447 = vmax.xlane.f32.xlu0 %v446_v29 }
 0x125   : > { %444 = vmax.xlane.f32.xlu2 %v443_v30 }
 0x127   : > { %v373_v31 = vpop.xlane.xlu1 %372 }
 0x128   : > { %v382_v32 = vpop.xlane.xlu0 %381  ;;  %v422_v33 = vsel %vm418_vm1, %v373_v31, %v405_v23  ;;  %v414_v34 = vpop.xlane.xlu2 %413 }
 0x129   : > { %v434_v35 = vadd.f32 %v657_v8, %v422_v33  ;;  %v425_v37 = vsel %vm418_vm1, %v382_v32, %v414_v34 }
 0x12a   : > { %v437_v39 = vadd.f32 %v657_v8, %v425_v37 }
 0x12b   : > { %v449_v36 = vsel %vm439_vm2, %v434_v35, -inf }
 0x12c   : > { %450 = vmax.xlane.f32.xlu1 %v449_v36  ;;  %v458_v43 = vsel %vm439_vm2, %v437_v39, -inf }
 0x12f   : > { %v385_v38 = vpop.xlane.xlu1 %384 }
 0x130   : > { %v417_v40 = vpop.xlane.xlu0 %416 }
 0x131   : > { %v426_v41 = vsel %vm418_vm1, %v385_v38, %v417_v40 }
 0x132   : > { %v438_v42 = vadd.f32 %v657_v8, %v426_v41 }
 0x134   : > { %459 = vmax.xlane.f32.xlu1 %v458_v43  ;;  %v461_v44 = vsel %vm439_vm2, %v438_v42, -inf }
 0x135   : > { %462 = vmax.xlane.f32.xlu2 %v461_v44 }
 0x137   : > { %v411_v45 = vpop.xlane.xlu1 %410 }
 0x138   : > { %v424_v46 = vsel %vm418_vm1, %v379_v19, %v411_v45 }
 0x139   : > { %v436_v47 = vadd.f32 %v657_v8, %v424_v46 }
 0x13b   : > { %v455_v48 = vsel %vm439_vm2, %v436_v47, -inf }
 0x13c   : > { %456 = vmax.xlane.f32.xlu0 %v455_v48 }
 0x17f   : > { %v442_v49 = vpop.xlane.xlu1 %441 }
 0x180   : > { %v826_v50 = vsub.f32 %v431_v12, %v442_v49 }
 0x182   : > { %v472_v51 = vmul.f32 1.442695, %v826_v50 }
 0x184   : > { %658 = vpow2.f32 %v472_v51 }
 0x188   : > { %v454_v52 = vpop.xlane.xlu2 %453 }
 0x189   : > { %v829_v53 = vsub.f32 %v435_v17, %v454_v52 }
 0x18a   : > { %v659_v54 = vpop.eup %658 }
 0x18b   : > { %v480_v55 = vmul.f32 1.442695, %v829_v53  ;;  %v488_v56 = vsel %vm439_vm2, %v659_v54, 0.0 }
 0x18c   : > { %489 = vadd.xlane.f32.xlu0 %v488_v56 }
 0x18d   : > { %660 = vpow2.f32 %v480_v55 }
 0x193   : > { %v661_v57 = vpop.eup %660 }
 0x194   : > { %v500_v58 = vsel %vm439_vm2, %v661_v57, 0.0 }
 0x195   : > { %501 = vadd.xlane.f32.xlu1 %v500_v58 }
 0x197   : > { %v448_v59 = vpop.xlane.xlu0 %447 }
 0x198   : > { %v445_v60 = vpop.xlane.xlu2 %444  ;;  %v834_v61 = vsub.f32 %v433_v27, %v448_v59 }
 0x199   : > { %v836_v62 = vsub.f32 %v432_v28, %v445_v60 }
 0x19a   : > { %v476_v63 = vmul.f32 1.442695, %v834_v61 }
 0x19b   : > { %v474_v0 = vmul.f32 1.442695, %v836_v62 }
 0x19c   : > { %662 = vpow2.f32 %v476_v63 }
 0x19d   : > { %664 = vpow2.f32 %v474_v0 }
 0x19f   : > { %v451_v1 = vpop.xlane.xlu1 %450 }
 0x1a0   : > { %v840_v2 = vsub.f32 %v434_v35, %v451_v1 }
 0x1a2   : > { %v663_v3 = vpop.eup %662  ;;  %v478_v4 = vmul.f32 1.442695, %v840_v2 }
 0x1a3   : > { %v665_v5 = vpop.eup %664  ;;  %v494_v6 = vsel %vm439_vm2, %v663_v3, 0.0 }
 0x1a4   : > { %666 = vpow2.f32 %v478_v4  ;;  %v491_v7 = vsel %vm439_vm2, %v665_v5, 0.0  ;;  %495 = vadd.xlane.f32.xlu2 %v494_v6 }
 0x1a5   : > { %492 = vadd.xlane.f32.xlu1 %v491_v7 }
 0x1a7   : > { %v460_v8 = vpop.xlane.xlu1 %459 }
 0x1a8   : > { %v463_v9 = vpop.xlane.xlu2 %462  ;;  %v845_v10 = vsub.f32 %v437_v39, %v460_v8 }
 0x1a9   : > { %v847_v11 = vsub.f32 %v438_v42, %v463_v9 }
 0x1aa   : > { %v667_v12 = vpop.eup %666  ;;  %v484_v13 = vmul.f32 1.442695, %v845_v10 }
 0x1ab   : > { %v486_v14 = vmul.f32 1.442695, %v847_v11  ;;  %v497_v15 = vsel %vm439_vm2, %v667_v12, 0.0 }
 0x1ac   : > { %668 = vpow2.f32 %v484_v13  ;;  %498 = vadd.xlane.f32.xlu0 %v497_v15 }
 0x1ad   : > { %670 = vpow2.f32 %v486_v14 }
 0x1af   : > { %v457_v16 = vpop.xlane.xlu0 %456 }
 0x1b0   : > { %v469_v17 = vsub.f32 %v436_v47, %v457_v16 }
 0x1b2   : > { %v669_v18 = vpop.eup %668  ;;  %v482_v19 = vmul.f32 1.442695, %v469_v17 }
 0x1b3   : > { %v671_v20 = vpop.eup %670  ;;  %v506_v21 = vsel %vm439_vm2, %v669_v18, 0.0 }
 0x1b4   : > { %672 = vpow2.f32 %v482_v19  ;;  %v509_v22 = vsel %vm439_vm2, %v671_v20, 0.0  ;;  %507 = vadd.xlane.f32.xlu0 %v506_v21 }
 0x1b5   : > { %510 = vadd.xlane.f32.xlu1 %v509_v22 }
 0x1ba   : > { %v673_v23 = vpop.eup %672 }
 0x1bb   : > { %v503_v24 = vsel %vm439_vm2, %v673_v23, 0.0 }
 0x1bc   : > { %504 = vadd.xlane.f32.xlu2 %v503_v24 }
 0x1ff   : > { %v490_v25 = vpop.xlane.xlu0 %489 }
 0x200   : > { %674 = vlog2.f32 %v490_v25 }
 0x206   : > { %v675_v26 = vpop.eup %674 }
 0x207   : > { %v513_v27 = vmul.f32 0.6931472, %v675_v26 }
 0x208   : > { %v502_v28 = vpop.xlane.xlu1 %501 }
 0x209   : > { %v528_v29 = vsub.f32 %v826_v50, %v513_v27  ;;  %676 = vlog2.f32 %v502_v28 }
 0x20b   : > { %536 = vst.msk [vmem:[%s859_s20] sm:$0xff] %vm439_vm2, %v528_v29 }
 0x20f   : > { %v677_v30 = vpop.eup %676 }
 0x210   : > { %v521_v31 = vmul.f32 0.6931472, %v677_v30 }
 0x212   : > { %v532_v32 = vsub.f32 %v829_v53, %v521_v31 }
 0x214   : > { %540 = vst.msk [vmem:[%s859_s20 + $0x20] sm:$0xff] %vm439_vm2, %v532_v32 }
 0x217   : > { %v496_v33 = vpop.xlane.xlu2 %495 }
 0x218   : > { %678 = vlog2.f32 %v496_v33  ;;  %v493_v34 = vpop.xlane.xlu1 %492 }
 0x219   : > { %680 = vlog2.f32 %v493_v34 }
 0x21e   : > { %v679_v35 = vpop.eup %678 }
 0x21f   : > { %v681_v36 = vpop.eup %680  ;;  %v517_v37 = vmul.f32 0.6931472, %v679_v35  ;;  %v499_v38 = vpop.xlane.xlu0 %498 }
 0x220   : > { %v515_v39 = vmul.f32 0.6931472, %v681_v36  ;;  %682 = vlog2.f32 %v499_v38 }
 0x221   : > { %v530_v40 = vsub.f32 %v834_v61, %v517_v37 }
 0x222   : > { %v529_v41 = vsub.f32 %v836_v62, %v515_v39 }
 0x223   : > { %538 = vst.msk [vmem:[%s859_s20 + $0x10] sm:$0xff] %vm439_vm2, %v530_v40 }
 0x224   : > { %537 = vst.msk [vmem:[%s859_s20 + $0x8] sm:$0xff] %vm439_vm2, %v529_v41 }
 0x226   : > { %v683_v42 = vpop.eup %682 }
 0x227   : > { %v519_v43 = vmul.f32 0.6931472, %v683_v42  ;;  %v508_v44 = vpop.xlane.xlu0 %507 }
 0x228   : > { %684 = vlog2.f32 %v508_v44  ;;  %v511_v45 = vpop.xlane.xlu1 %510 }
 0x229   : > { %v531_v46 = vsub.f32 %v840_v2, %v519_v43  ;;  %686 = vlog2.f32 %v511_v45 }
 0x22b   : > { %539 = vst.msk [vmem:[%s859_s20 + $0x18] sm:$0xff] %vm439_vm2, %v531_v46 }
 0x22e   : > { %v685_v47 = vpop.eup %684 }
 0x22f   : > { %v687_v48 = vpop.eup %686  ;;  %v525_v49 = vmul.f32 0.6931472, %v685_v47  ;;  %v505_v50 = vpop.xlane.xlu2 %504 }
 0x230   : > { %v527_v51 = vmul.f32 0.6931472, %v687_v48  ;;  %688 = vlog2.f32 %v505_v50 }
 0x231   : > { %v534_v52 = vsub.f32 %v845_v10, %v525_v49 }
 0x232   : > { %v535_v53 = vsub.f32 %v847_v11, %v527_v51 }
 0x233   : > { %542 = vst.msk [vmem:[%s859_s20 + $0x30] sm:$0xff] %vm439_vm2, %v534_v52 }
 0x234   : > { %543 = vst.msk [vmem:[%s859_s20 + $0x38] sm:$0xff] %vm439_vm2, %v535_v53 }
 0x236   : > { %v689_v54 = vpop.eup %688 }
 0x237   : > { %v523_v55 = vmul.f32 0.6931472, %v689_v54 }
 0x239   : > { %v533_v56 = vsub.f32 %v469_v17, %v523_v55 }
 0x23b   : > { %541 = vst.msk [vmem:[%s859_s20 + $0x28] sm:$0xff] %vm439_vm2, %v533_v56 }
 0x23c PF: > { %s14_s15 = sadd.s32 1, %s696_s15  }
 0x23d   : > { %p11_p4 = scmp.ge.s32.totalorder %s14_s15, 4  }
 0x23f   :  { %13 = sbr.rel (!%p11_p4) target bundleno = 1 (0x1), region = 69 }

</bundles_post_ra>
